<compile_context>
chip_gen: v5e
topology: v5e:2x2
jax: 0.10.0
libtpu: 0.0.40
codegen_flags: <defaults>
</compile_context>

<pallas_src>
import functools

import jax
import jax.numpy as jnp
from jax.experimental import pallas as pl
from jax.experimental.pallas import tpu as pltpu


def _linear_relu_kernel(x_ref, w_ref, b_ref, o_ref, acc_ref):
    # x_ref: (tm, tk) bf16, w_ref: (tk, tn) bf16, b_ref: (1, tn) f32,
    # o_ref: (tm, tn) f32, acc_ref: (tm, tn) f32 scratch (persists over K axis).
    k = pl.program_id(2)

    @pl.when(k == 0)
    def _():
        acc_ref[...] = jnp.zeros_like(acc_ref)

    acc_ref[...] += jnp.dot(
        x_ref[...], w_ref[...], preferred_element_type=jnp.float32
    )

    @pl.when(k == pl.num_programs(2) - 1)
    def _():
        out = acc_ref[...] + b_ref[...]          # broadcast (1, tn) over rows
        o_ref[...] = jnp.maximum(out, 0.0).astype(o_ref.dtype)


def _round_up(v, m):
    return ((v + m - 1) // m) * m


@functools.partial(jax.jit, static_argnames=("tile_m", "tile_n", "tile_k"))
def linear_relu(x, w, b, *, tile_m=256, tile_n=512, tile_k=512):
    """relu(x @ w + b) as a tiled Pallas TPU kernel.

    x: (M, K) float32
    w: (K, N) float32   (transposed PyTorch weight)
    b: (N,)   float32
    """
    orig_dtype = x.dtype
    M, K = x.shape
    K2, N = w.shape
    assert K == K2 and b.shape == (N,)

    # Tile sizes: clamp to (rounded-up) problem dims, enforce (8,128) alignment.
    tm = _round_up(min(tile_m, _round_up(M, 8)), 8)
    tn = _round_up(min(tile_n, _round_up(N, 128)), 128)
    tk = _round_up(min(tile_k, _round_up(K, 128)), 128)

    # Pad to exact tile multiples (zeros are a no-op for the matmul).
    Mp, Kp, Np = _round_up(M, tm), _round_up(K, tk), _round_up(N, tn)

    x_p = x.astype(jnp.bfloat16)
    w_p = w.astype(jnp.bfloat16)
    if (Mp, Kp) != (M, K):
        x_p = jnp.pad(x_p, ((0, Mp - M), (0, Kp - K)))
    if (Kp, Np) != (K, N):
        w_p = jnp.pad(w_p, ((0, Kp - K), (0, Np - N)))
    b_p = b.astype(jnp.float32).reshape(1, N)
    if Np != N:
        b_p = jnp.pad(b_p, ((0, 0), (0, Np - N)))

    grid = (Mp // tm, Np // tn, Kp // tk)

    cost = pl.CostEstimate(
        flops=2 * Mp * Np * Kp,
        transcendentals=0,
        bytes_accessed=Mp * Kp * 2 + Kp * Np * 2 + Np * 4 + Mp * Np * 4,
    )

    out = pl.pallas_call(
        _linear_relu_kernel,
        out_shape=jax.ShapeDtypeStruct((Mp, Np), jnp.float32),
        grid_spec=pltpu.PrefetchScalarGridSpec(
            num_scalar_prefetch=0,
            grid=grid,
            in_specs=[
                pl.BlockSpec((tm, tk), lambda i, j, k: (i, k)),   # x tile
                pl.BlockSpec((tk, tn), lambda i, j, k: (k, j)),   # w tile
                pl.BlockSpec((1, tn), lambda i, j, k: (0, j)),    # bias tile
            ],
            out_specs=pl.BlockSpec((tm, tn), lambda i, j, k: (i, j)),
            scratch_shapes=[pltpu.VMEM((tm, tn), jnp.float32)],
        ),
        compiler_params=pltpu.CompilerParams(
            dimension_semantics=("parallel", "parallel", "arbitrary"),
            vmem_limit_bytes=32 * 1024 * 1024,
        ),
        cost_estimate=cost,
    )(x_p, w_p, b_p)

    if (Mp, Np) != (M, N):
        out = out[:M, :N]
    return out.astype(orig_dtype)


def init_linear_params(key, input_size, output_size):
    """Deterministic init mimicking nn.Linear's uniform(-1/sqrt(in), 1/sqrt(in))."""
    kw, kb = jax.random.split(key)
    bound = 1.0 / (input_size ** 0.5)
    # PyTorch stores weight as (out, in); we keep its transpose (in, out).
    w = jax.random.uniform(
        kw, (input_size, output_size), jnp.float32, minval=-bound, maxval=bound
    )
    b = jax.random.uniform(
        kb, (output_size,), jnp.float32, minval=-bound, maxval=bound
    )
    return w, b


def _reference(x, w, b):
    # Same numerics as the kernel: bf16 operands, f32 accumulation.
    acc = jnp.dot(
        x.astype(jnp.bfloat16), w.astype(jnp.bfloat16),
        preferred_element_type=jnp.float32,
    )
    return jnp.maximum(acc + b, 0.0)


if __name__ == "__main__":
    key = jax.random.PRNGKey(0)
    k_x, k_p, k_x2, k_p2 = jax.random.split(key, 4)

    # Small demo consistent with the module's forward.
    batch, input_size, output_size = 16, 64, 128
    x = jax.random.normal(k_x, (batch, input_size), jnp.float32)
    w, b = init_linear_params(k_p, input_size, output_size)

    out = jax.block_until_ready(linear_relu(x, w, b))
    ref = _reference(x, w, b)
    assert out.shape == (batch, output_size)
    assert jnp.allclose(out, ref, atol=1e-3, rtol=1e-3)

    # Second run that exercises K-reduction accumulation, N tiling and padding.
    M2, K2, N2 = 512, 768, 384
    x2 = jax.random.normal(k_x2, (M2, K2), jnp.float32)
    w2, b2 = init_linear_params(k_p2, K2, N2)
    out2 = jax.block_until_ready(linear_relu(x2, w2, b2))
    ref2 = _reference(x2, w2, b2)
    assert out2.shape == (M2, N2)
    assert jnp.allclose(out2, ref2, atol=5e-3, rtol=5e-3)

    print("KERNEL_OK")
</pallas_src>

<mosaic_0001>
module attributes {stable_mosaic.version = 11 : i64} {
  func.func @_linear_relu_kernel(%arg0: i32, %arg1: i32, %arg2: i32, %arg3: memref<16x128xbf16, #tpu.memory_space<vmem>>, %arg4: memref<128x128xbf16, #tpu.memory_space<vmem>>, %arg5: memref<1x128xf32, #tpu.memory_space<vmem>>, %arg6: memref<16x128xf32, #tpu.memory_space<vmem>>, %arg7: memref<16x128xf32, #tpu.memory_space<vmem>>) attributes {dimension_semantics = [#tpu.dimension_semantics<parallel>, #tpu.dimension_semantics<parallel>, #tpu.dimension_semantics<arbitrary>], iteration_bounds = array<i64: 1, 1, 1>, scalar_prefetch = 0 : i64, scratch_operands = 1 : i64, tpu.core_type = #tpu.core_type<tc>, window_params = [{transform_indices = @transform_0, window_bounds = array<i64: 16, 128>}, {transform_indices = @transform_1, window_bounds = array<i64: 128, 128>}, {transform_indices = @transform_2, window_bounds = array<i64: 1, 128>}, {transform_indices = @transform_3, window_bounds = array<i64: 16, 128>}]} {
    %c0_i32 = arith.constant 0 : i32
    %0 = arith.cmpi eq, %arg2, %c0_i32 : i32
    %1 = arith.extui %0 : i1 to i32
    %c0_i32_0 = arith.constant 0 : i32
    %2 = arith.cmpi ne, %1, %c0_i32_0 : i32
    scf.if %2 {
      %cst_10 = arith.constant 0.000000e+00 : f32
      %12 = vector.broadcast %cst_10 : f32 to vector<16x128xf32>
      %c0_11 = arith.constant 0 : index
      %c0_12 = arith.constant 0 : index
      %13 = vector.load %arg7[%c0_11, %c0_12] : memref<16x128xf32, #tpu.memory_space<vmem>>, vector<16x128xf32>
      tpu.vector_store %arg7[%c0_11, %c0_12], %12 {strides = array<i32>} : memref<16x128xf32, #tpu.memory_space<vmem>>, vector<16x128xf32>,
    } else {
    }
    %c0 = arith.constant 0 : index
    %c0_1 = arith.constant 0 : index
    %3 = vector.load %arg7[%c0, %c0_1] : memref<16x128xf32, #tpu.memory_space<vmem>>, vector<16x128xf32>
    %c0_2 = arith.constant 0 : index
    %c0_3 = arith.constant 0 : index
    %4 = vector.load %arg3[%c0_2, %c0_3] : memref<16x128xbf16, #tpu.memory_space<vmem>>, vector<16x128xbf16>
    %c0_4 = arith.constant 0 : index
    %c0_5 = arith.constant 0 : index
    %5 = vector.load %arg4[%c0_4, %c0_5] : memref<128x128xbf16, #tpu.memory_space<vmem>>, vector<128x128xbf16>
    %cst = arith.constant dense<0.000000e+00> : vector<16x128xf32>
    %6 = tpu.matmul %4, %5, %cst {dimension_numbers = #tpu.dot_dimension_numbers<[1], [0], [0], [1], [0, 0, 1, 1], [], []>} : vector<16x128xbf16>, vector<128x128xbf16>, vector<16x128xf32> -> vector<16x128xf32>
    %7 = arith.addf %3, %6 : vector<16x128xf32>
    %c0_6 = arith.constant 0 : index
    %c0_7 = arith.constant 0 : index
    %8 = vector.load %arg7[%c0_6, %c0_7] : memref<16x128xf32, #tpu.memory_space<vmem>>, vector<16x128xf32>
    tpu.vector_store %arg7[%c0_6, %c0_7], %7 {strides = array<i32>} : memref<16x128xf32, #tpu.memory_space<vmem>>, vector<16x128xf32>,
    %c0_i32_8 = arith.constant 0 : i32
    %9 = arith.cmpi eq, %arg2, %c0_i32_8 : i32
    %10 = arith.extui %9 : i1 to i32
    %c0_i32_9 = arith.constant 0 : i32
    %11 = arith.cmpi ne, %10, %c0_i32_9 : i32
    scf.if %11 {
      %c0_10 = arith.constant 0 : index
      %c0_11 = arith.constant 0 : index
      %12 = vector.load %arg7[%c0_10, %c0_11] : memref<16x128xf32, #tpu.memory_space<vmem>>, vector<16x128xf32>
      %c0_12 = arith.constant 0 : index
      %c0_13 = arith.constant 0 : index
      %13 = vector.load %arg5[%c0_12, %c0_13] : memref<1x128xf32, #tpu.memory_space<vmem>>, vector<1x128xf32>
      %14 = vector.broadcast %13 : vector<1x128xf32> to vector<16x128xf32>
      %15 = arith.addf %12, %14 : vector<16x128xf32>
      %cst_14 = arith.constant 0.000000e+00 : f32
      %16 = vector.broadcast %cst_14 : f32 to vector<16x128xf32>
      %17 = arith.maximumf %15, %16 : vector<16x128xf32>
      %c0_15 = arith.constant 0 : index
      %c0_16 = arith.constant 0 : index
      %18 = vector.load %arg6[%c0_15, %c0_16] : memref<16x128xf32, #tpu.memory_space<vmem>>, vector<16x128xf32>
      tpu.vector_store %arg6[%c0_15, %c0_16], %17 {strides = array<i32>} : memref<16x128xf32, #tpu.memory_space<vmem>>, vector<16x128xf32>,
    } else {
    }
    return
  }
  func.func @transform_0(%arg0: i32, %arg1: i32, %arg2: i32) -> (i32, i32) {
    %c0_i32 = arith.constant 0 : i32
    return %arg0, %arg2 : i32, i32
  }
  func.func @transform_1(%arg0: i32, %arg1: i32, %arg2: i32) -> (i32, i32) {
    %c0_i32 = arith.constant 0 : i32
    return %arg2, %arg1 : i32, i32
  }
  func.func @transform_2(%arg0: i32, %arg1: i32, %arg2: i32) -> (i32, i32) {
    %c0_i32 = arith.constant 0 : i32
    %c0_i32_0 = arith.constant 0 : i32
    return %c0_i32, %arg1 : i32, i32
  }
  func.func @transform_3(%arg0: i32, %arg1: i32, %arg2: i32) -> (i32, i32) {
    %c0_i32 = arith.constant 0 : i32
    return %arg0, %arg1 : i32, i32
  }
}

</mosaic_0001>

<bundles_post_ra>
// kernel: linear_relu.1
= control target key start
LH: loop header
LB: loop body
LE: loop exit
PB: predicated region body
PF: predicated region fallthrough
CT: control target
= control target key end

     0   :  { %s277_s0 = inlined_call_operand.vmem [shape: bf16[16,128], index: 0, kind: input, shape index: {}]   ;;  %s278_s1 = inlined_call_operand.vmem [shape: bf16[128,128], index: 1, kind: input, shape index: {}]   ;;  %s279_s2 = inlined_call_operand.vmem [shape: f32[1,128], index: 2, kind: input, shape index: {}]   ;;  %s280_s3 = inlined_call_operand.hbm [shape: f32[16,128], index: 3, kind: output, shape index: {}]  }
   0x1   :  { %v190_v0 = vld [vmem:[%s278_s1 + $0x38] sm:$0xff]  ;;  %v189_v1 = vld [vmem:[%s278_s1 + $0x30] sm:$0xff] }
   0x2   :  { %95 = vmatpush.bf16.msra.mxu0 %v190_v0 }
   0x3   :  { %8 = vsyncpa [#allocation4], 0  ;;  %v188_v2 = vld [vmem:[%s278_s1 + $0x28] sm:$0xff]  ;;  %v187_v3 = vld [vmem:[%s278_s1 + $0x20] sm:$0xff]  ;;  %s221_s5 = smov [#allocation3]   ;;  %s223_s9 = smov 8  }
   0x4   :  { %v186_v4 = vld [vmem:[%s278_s1 + $0x18] sm:$0xff]  ;;  %v185_v5 = vld [vmem:[%s278_s1 + $0x10] sm:$0xff]  ;;  %v184_v6 = vld [vmem:[%s278_s1 + $0x8] sm:$0xff]  ;;  %s132_s6 = sshll.u32 %s221_s5, 4  ;;  %s133_s6 = int_to_ptr.vmem [resolvable:$true] %s132_s6 }
   0x5   :  { %v183_v7 = vld [vmem:[%s278_s1] sm:$0xff]  ;;  %s134_s1 = sshll.u32 %s280_s3, 4  ;;  %s135_s1 = int_to_ptr.hbm [resolvable:$true] %s134_s1 }
   0x6   :  { %96 = vmatpush.bf16.msra.mxu0 %v189_v1  ;;  %v182_v8 = vld [vmem:[%s277_s0] sm:$0xff]  ;;  %s222_s0 = smov 128  }
   0x7   :  { %v194_v9 = vld [vmem:[%s279_s2] ss:$0 sm:$0xff] }
   0xa   :  { %97 = vmatpush.bf16.msra.mxu0 %v188_v2 }
   0xe   :  { %98 = vmatpush.bf16.msra.mxu0 %v187_v3 }
  0x12   :  { %99 = vmatpush.bf16.msra.mxu0 %v186_v4 }
  0x16   :  { %100 = vmatpush.bf16.msra.mxu0 %v185_v5 }
  0x1a   :  { %101 = vmatpush.bf16.msra.mxu0 %v184_v6 }
  0x1e   :  { %102 = vmatpush.bf16.msra.mxu0 %v183_v7 }
  0x21   :  { %103 = vmatmul.bf16.vlgmr.msra.gmra.mxu0 %v182_v8 }
  0x9e   :  { %v104_v10 = vpop.f32.mrf.mxu0 }
  0x9f   :  { %v122_v11 = vadd.f32 %v194_v9, %v104_v10 }
  0xa1   :  { %v124_v12 = vmax.f32 %v122_v11, 0.0 }
  0xa3   :  { %126 = vst [vmem:[#allocation3] sm:$0xff] %v124_v12 }
  0xa6   :  { %v106_v13 = vpop.f32.mrf.mxu0 }
  0xa7   :  { %v123_v14 = vadd.f32 %v194_v9, %v106_v13 }
  0xa9   :  { %v125_v15 = vmax.f32 %v123_v14, 0.0 }
  0xab   :  { %127 = vst [vmem:[#allocation3 + $0x8] sm:$0xff] %v125_v15 }
  0xac   :  { %140 = dma.vmem_to_hbm [thread:$0]  %s133_s6, 256, %s135_s1, [#allocation4], %s222_s0, %s222_s0, %s223_s9  }
  0xad   :  { %219 = dma.done.wait [#allocation4], 256  }
  0xae   :  { %220 = vsyncadd [#allocation4], 4294967040 }
  0xaf   :  { %145 = vsyncpa [#allocation4], 1 }

</bundles_post_ra>
